<compile_context>
chip_gen: v7x
topology: tpu7x:2x2x1
jax: 0.10.0
libtpu: 0.0.40
codegen_flags: <defaults>
</compile_context>

<pallas_src>
import math

import numpy as np
import jax
import jax.numpy as jnp
from jax.experimental import pallas as pl
from jax.experimental.pallas import tpu as pltpu


class ImageList:
    """Minimal stand-in for torchvision's ImageList."""

    def __init__(self, tensors, image_sizes):
        self.tensors = tensors
        self.image_sizes = image_sizes


# ----------------------------------------------------------------------------
# Bilinear interpolation weight matrices (match F.interpolate, mode='bilinear',
# align_corners=False, recompute_scale_factor=True -> src scale = in / out).
# ----------------------------------------------------------------------------
def _bilinear_rows(out_size: int, in_size: int) -> np.ndarray:
    if out_size == in_size:
        return np.eye(out_size, dtype=np.float32)
    scale = float(in_size) / float(out_size)
    dst = np.arange(out_size, dtype=np.float64)
    src = np.maximum((dst + 0.5) * scale - 0.5, 0.0)
    i0 = np.minimum(np.floor(src).astype(np.int64), in_size - 1)
    i1 = np.minimum(i0 + 1, in_size - 1)
    w1 = (src - i0).astype(np.float32)
    w0 = (1.0 - w1).astype(np.float32)
    mat = np.zeros((out_size, in_size), dtype=np.float32)
    rows = np.arange(out_size)
    np.add.at(mat, (rows, i0), w0)
    np.add.at(mat, (rows, i1), w1)
    return mat


# ----------------------------------------------------------------------------
# VMEM planning: pick an output-row tile size (divisor of Hp, multiple of 8)
# and the matmul order.  Column-first is only used when no row tiling is
# needed (the (H, Wp) intermediate would otherwise be recomputed per tile).
# ----------------------------------------------------------------------------
_VMEM_BUDGET = 24 * 1024 * 1024      # target working set per step
_VMEM_LIMIT = 48 * 1024 * 1024       # scoped VMEM limit (safe on v5e/v6e/v7x)


def _vmem_bytes(h, w, hp, wp, th, col_first):
    f = 4
    img = 2 * h * w * f              # double-buffered input channel
    xnorm = h * w * f                # normalized temporary
    wrow = 2 * th * h * f
    wcol = 2 * w * wp * f
    out = 2 * th * wp * f
    inter = (h * wp * f) if col_first else (th * w * f)
    return img + xnorm + wrow + wcol + out + inter


def _choose_plan(h, w, hp, wp):
    col_flops = h * w * wp + hp * h * wp      # (img @ WcT) then (Wr @ .)
    row_flops = hp * h * w + hp * w * wp      # (Wr @ img) then (. @ WcT)
    col_first = col_flops < row_flops
    if _vmem_bytes(h, w, hp, wp, hp, col_first) <= _VMEM_BUDGET:
        return hp, col_first
    # Row-tile the output canvas; row-first order keeps tiles independent.
    divs = [d for d in range(8, hp + 1, 8) if hp % d == 0]
    for th in sorted(divs, reverse=True):
        if _vmem_bytes(h, w, hp, wp, th, False) <= _VMEM_BUDGET:
            return th, False
    # TODO(synk): for extremely large inputs the full input channel is still
    # resident; a scalar-prefetch input-row-window scheme would bound that too.
    return divs[0], False


# ----------------------------------------------------------------------------
# Fused normalize + separable bilinear resize + pad kernel.
# ----------------------------------------------------------------------------
def _make_kernel(col_first):
    def kernel(_batched_hbm, img_ref, mean_ref, istd_ref, wrow_ref, wcolt_ref,
               out_ref):
        c = pl.program_id(0)
        x = (img_ref[...] - mean_ref[c]) * istd_ref[c]          # (H, W)
        wrow = wrow_ref[...]                                    # (TH, H)
        wcolt = wcolt_ref[...]                                  # (W, Wp)
        if col_first:
            t = jnp.dot(x, wcolt, preferred_element_type=jnp.float32)    # (H, Wp)
            r = jnp.dot(wrow, t, preferred_element_type=jnp.float32)     # (TH, Wp)
        else:
            t = jnp.dot(wrow, x, preferred_element_type=jnp.float32)     # (TH, W)
            r = jnp.dot(t, wcolt, preferred_element_type=jnp.float32)    # (TH, Wp)
        out_ref[...] = r.astype(out_ref.dtype)
    return kernel


def _resize_pad_into(batched, img, mean, istd, wrow, wcolt, n_idx):
    """Write the normalized+resized image `n_idx` into its slice of `batched`."""
    N, C, Hp, Wp = batched.shape
    _, H, W = img.shape
    th, col_first = _choose_plan(H, W, Hp, Wp)
    rt = Hp // th

    return pl.pallas_call(
        _make_kernel(col_first),
        out_shape=jax.ShapeDtypeStruct(batched.shape, batched.dtype),
        grid=(C, rt),
        in_specs=[
            pl.BlockSpec(memory_space=pl.ANY),                         # aliased batched buffer
            pl.BlockSpec((None, H, W), lambda c, r: (c, 0, 0)),        # image channel
            pl.BlockSpec(memory_space=pltpu.MemorySpace.SMEM),         # mean (C,)
            pl.BlockSpec(memory_space=pltpu.MemorySpace.SMEM),         # 1/std (C,)
            pl.BlockSpec((th, H), lambda c, r: (r, 0)),                # W_row tile
            pl.BlockSpec((W, Wp), lambda c, r: (0, 0)),                # W_col^T (resident)
        ],
        out_specs=pl.BlockSpec((None, None, th, Wp),
                               lambda c, r: (n_idx, c, r, 0)),
        input_output_aliases={0: 0},
        compiler_params=pltpu.CompilerParams(
            dimension_semantics=("parallel", "parallel"),
            vmem_limit_bytes=_VMEM_LIMIT),
    )(batched, img, mean, istd, wrow, wcolt)


@jax.jit
def _batch_forward(images, wrows, wcolts, mean, istd):
    n = len(images)
    c = images[0].shape[0]
    hp = wrows[0].shape[0]
    wp = wcolts[0].shape[1]
    batched = jnp.zeros((n, c, hp, wp), dtype=images[0].dtype)
    for i in range(n):
        batched = _resize_pad_into(batched, images[i], mean, istd,
                                   wrows[i], wcolts[i], i)
    return batched


def resize_boxes(boxes, original_size, new_size):
    ratio_h = jnp.float32(new_size[0]) / jnp.float32(original_size[0])
    ratio_w = jnp.float32(new_size[1]) / jnp.float32(original_size[1])
    xmin = boxes[:, 0] * ratio_w
    ymin = boxes[:, 1] * ratio_h
    xmax = boxes[:, 2] * ratio_w
    ymax = boxes[:, 3] * ratio_h
    return jnp.stack((xmin, ymin, xmax, ymax), axis=1)


class GeneralizedRCNNTransform:
    """JAX/Pallas port of torchvision's GeneralizedRCNNTransform forward."""

    def __init__(self, min_size, max_size, image_mean, image_std):
        if not isinstance(min_size, (list, tuple)):
            min_size = (min_size,)
        self.min_size = min_size
        self.max_size = max_size
        self.image_mean = image_mean
        self.image_std = image_std
        self._mean = jnp.asarray(image_mean, dtype=jnp.float32)
        self._inv_std = jnp.asarray(
            1.0 / np.asarray(image_std, dtype=np.float32), dtype=jnp.float32)
        self._weight_cache = {}

    # -- trace-time size math (identical Python float math to PyTorch) -------
    def _resized_hw(self, h, w):
        size = float(self.min_size[-1])
        im_min = float(min(h, w))
        im_max = float(max(h, w))
        scale = size / im_min
        if im_max * scale > float(self.max_size):
            scale = float(self.max_size) / im_max
        return int(math.floor(h * scale)), int(math.floor(w * scale))

    # -- cached, zero-padded bilinear weight matrices -------------------------
    def _get_wrow(self, ho, h, hp):
        key = ("r", ho, h, hp)
        mat = self._weight_cache.get(key)
        if mat is None:
            m = np.zeros((hp, h), dtype=np.float32)
            m[:ho, :] = _bilinear_rows(ho, h)
            mat = jnp.asarray(m)
            self._weight_cache[key] = mat
        return mat

    def _get_wcolT(self, wo, w_in, wp):
        key = ("c", wo, w_in, wp)
        mat = self._weight_cache.get(key)
        if mat is None:
            m = np.zeros((w_in, wp), dtype=np.float32)
            m[:, :wo] = _bilinear_rows(wo, w_in).T
            mat = jnp.asarray(m)
            self._weight_cache[key] = mat
        return mat

    # -- forward ---------------------------------------------------------------
    def __call__(self, images, targets=None):
        images = [jnp.asarray(img, dtype=jnp.float32) for img in images]

        resized_hw = []
        for img in images:
            _, h, w = img.shape
            resized_hw.append(self._resized_hw(h, w))

        # batch_images(size_divisible=32)
        stride = 32
        max_h = max(oh for oh, _ in resized_hw)
        max_w = max(ow for _, ow in resized_hw)
        hp = int(math.ceil(float(max_h) / stride) * stride)
        wp = int(math.ceil(float(max_w) / stride) * stride)

        wrows, wcolts = [], []
        for img, (oh, ow) in zip(images, resized_hw):
            _, h, w = img.shape
            wrows.append(self._get_wrow(oh, h, hp))
            wcolts.append(self._get_wcolT(ow, w, wp))

        batched = _batch_forward(tuple(images), tuple(wrows), tuple(wcolts),
                                 self._mean, self._inv_std)

        if targets is not None:
            new_targets = []
            for t, img, (oh, ow) in zip(targets, images, resized_hw):
                t = dict(t)
                if "boxes" in t:
                    t["boxes"] = resize_boxes(t["boxes"],
                                              tuple(img.shape[-2:]), (oh, ow))
                # TODO(synk): target 'masks' nearest-neighbor resize path not implemented.
                new_targets.append(t)
            targets = new_targets

        image_sizes = [(oh, ow) for (oh, ow) in resized_hw]
        return ImageList(batched, image_sizes), targets


# ----------------------------------------------------------------------------
# Pure-JAX reference of the same fused math (for a sanity check in __main__).
# ----------------------------------------------------------------------------
def _reference_image(img, mean, istd, wrow, wcolt):
    x = (img - mean[:, None, None]) * istd[:, None, None]
    return jnp.einsum("hk,ckw,wj->chj", wrow, x, wcolt)


if __name__ == "__main__":
    key = jax.random.PRNGKey(0)
    k1, k2 = jax.random.split(key)
    # two variable-sized RGB images, CHW
    images = [
        jax.random.uniform(k1, (3, 13, 17), dtype=jnp.float32),
        jax.random.uniform(k2, (3, 16, 11), dtype=jnp.float32),
    ]
    transform = GeneralizedRCNNTransform(
        min_size=24,
        max_size=40,
        image_mean=[0.485, 0.456, 0.406],
        image_std=[0.229, 0.224, 0.225],
    )

    image_list, _ = transform(images, targets=None)
    batched = jax.block_until_ready(image_list.tensors)
    assert batched.ndim == 4 and batched.shape[0] == 2

    # numerical sanity check against a plain-JAX reference of the same math
    mean = jnp.asarray([0.485, 0.456, 0.406], jnp.float32)
    istd = 1.0 / jnp.asarray([0.229, 0.224, 0.225], jnp.float32)
    hp, wp = batched.shape[-2:]
    for i, img in enumerate(images):
        _, h, w = img.shape
        oh, ow = image_list.image_sizes[i]
        wrow = transform._get_wrow(oh, h, hp)
        wcolt = transform._get_wcolT(ow, w, wp)
        ref = _reference_image(img, mean, istd, wrow, wcolt)
        np.testing.assert_allclose(np.asarray(batched[i]), np.asarray(ref),
                                   rtol=2e-3, atol=2e-3)

    # exercise the targets (box resize) path; reuses the cached jit/weights
    targets = [
        {"boxes": jnp.asarray([[1.0, 2.0, 10.0, 12.0]], jnp.float32)},
        {"boxes": jnp.asarray([[0.0, 0.0, 5.0, 8.0]], jnp.float32)},
    ]
    image_list2, targets2 = transform(images, targets)
    jax.block_until_ready(image_list2.tensors)
    assert targets2[0]["boxes"].shape == (1, 4)

    print("KERNEL_OK")
</pallas_src>

<mosaic_0001>
module attributes {stable_mosaic.version = 11 : i64} {
  func.func @kernel(%arg0: i32, %arg1: i32, %arg2: memref<2x3x64x32xf32, #tpu.memory_space<any>>, %arg3: memref<1x13x17xf32, #tpu.memory_space<vmem>>, %arg4: memref<3xf32, #tpu.memory_space<smem>>, %arg5: memref<3xf32, #tpu.memory_space<smem>>, %arg6: memref<64x13xf32, #tpu.memory_space<vmem>>, %arg7: memref<17x32xf32, #tpu.memory_space<vmem>>, %arg8: memref<1x1x64x32xf32, #tpu.memory_space<vmem>>) attributes {dimension_semantics = [#tpu.dimension_semantics<parallel>, #tpu.dimension_semantics<parallel>], iteration_bounds = array<i64: 3, 1>, scalar_prefetch = 0 : i64, scratch_operands = 0 : i64, tpu.core_type = #tpu.core_type<tc>, window_params = [{}, {transform_indices = @transform_1, window_bounds = array<i64: 1, 13, 17>}, {transform_indices = @transform_2, window_bounds = array<i64: 3>}, {transform_indices = @transform_3, window_bounds = array<i64: 3>}, {transform_indices = @transform_4, window_bounds = array<i64: 64, 13>}, {pipeline_mode = #tpu.pipeline_mode<synchronous>, transform_indices = @transform_5, window_bounds = array<i64: 17, 32>}, {transform_indices = @transform_6, window_bounds = array<i64: 1, 1, 64, 32>}]} {
    %c0 = arith.constant 0 : index
    %c0_0 = arith.constant 0 : index
    %c0_1 = arith.constant 0 : index
    %0 = vector.load %arg3[%c0, %c0_0, %c0_1] : memref<1x13x17xf32, #tpu.memory_space<vmem>>, vector<1x13x17xf32>
    %1 = vector.shape_cast %0 : vector<1x13x17xf32> to vector<13x17xf32>
    %2 = arith.index_cast %arg0 : i32 to index
    %3 = memref.load %arg4[%2] : memref<3xf32, #tpu.memory_space<smem>>
    %4 = vector.broadcast %3 : f32 to vector<13x17xf32>
    %5 = arith.subf %1, %4 : vector<13x17xf32>
    %6 = arith.index_cast %arg0 : i32 to index
    %7 = memref.load %arg5[%6] : memref<3xf32, #tpu.memory_space<smem>>
    %8 = vector.broadcast %7 : f32 to vector<13x17xf32>
    %9 = arith.mulf %5, %8 : vector<13x17xf32>
    %c0_2 = arith.constant 0 : index
    %c0_3 = arith.constant 0 : index
    %10 = vector.load %arg6[%c0_2, %c0_3] : memref<64x13xf32, #tpu.memory_space<vmem>>, vector<64x13xf32>
    %c0_4 = arith.constant 0 : index
    %c0_5 = arith.constant 0 : index
    %11 = vector.load %arg7[%c0_4, %c0_5] : memref<17x32xf32, #tpu.memory_space<vmem>>, vector<17x32xf32>
    %cst = arith.constant dense<0.000000e+00> : vector<13x32xf32>
    %12 = tpu.matmul %9, %11, %cst {dimension_numbers = #tpu.dot_dimension_numbers<[1], [0], [0], [1], [0, 0, 1, 1], [], []>} : vector<13x17xf32>, vector<17x32xf32>, vector<13x32xf32> -> vector<13x32xf32>
    %cst_6 = arith.constant dense<0.000000e+00> : vector<64x32xf32>
    %13 = tpu.matmul %10, %12, %cst_6 {dimension_numbers = #tpu.dot_dimension_numbers<[1], [0], [0], [1], [0, 0, 1, 1], [], []>} : vector<64x13xf32>, vector<13x32xf32>, vector<64x32xf32> -> vector<64x32xf32>
    %c0_7 = arith.constant 0 : index
    %c0_8 = arith.constant 0 : index
    %c0_9 = arith.constant 0 : index
    %c0_10 = arith.constant 0 : index
    %14 = vector.load %arg8[%c0_7, %c0_8, %c0_9, %c0_10] : memref<1x1x64x32xf32, #tpu.memory_space<vmem>>, vector<1x1x64x32xf32>
    %15 = vector.shape_cast %14 : vector<1x1x64x32xf32> to vector<64x32xf32>
    %16 = vector.shape_cast %13 : vector<64x32xf32> to vector<1x1x64x32xf32>
    tpu.vector_store %arg8[%c0_7, %c0_8, %c0_9, %c0_10], %16 {strides = array<i32>} : memref<1x1x64x32xf32, #tpu.memory_space<vmem>>, vector<1x1x64x32xf32>,
    return
  }
  func.func @transform_1(%arg0: i32, %arg1: i32) -> (i32, i32, i32) {
    %c0_i32 = arith.constant 0 : i32
    %c0_i32_0 = arith.constant 0 : i32
    %c0_i32_1 = arith.constant 0 : i32
    return %arg0, %c0_i32, %c0_i32_0 : i32, i32, i32
  }
  func.func @transform_2(%arg0: i32, %arg1: i32) -> i32 {
    %c0_i32 = arith.constant 0 : i32
    %c0_i32_0 = arith.constant 0 : i32
    return %c0_i32 : i32
  }
  func.func @transform_3(%arg0: i32, %arg1: i32) -> i32 {
    %c0_i32 = arith.constant 0 : i32
    %c0_i32_0 = arith.constant 0 : i32
    return %c0_i32 : i32
  }
  func.func @transform_4(%arg0: i32, %arg1: i32) -> (i32, i32) {
    %c0_i32 = arith.constant 0 : i32
    %c0_i32_0 = arith.constant 0 : i32
    return %arg1, %c0_i32 : i32, i32
  }
  func.func @transform_5(%arg0: i32, %arg1: i32) -> (i32, i32) {
    %c0_i32 = arith.constant 0 : i32
    %c0_i32_0 = arith.constant 0 : i32
    %c0_i32_1 = arith.constant 0 : i32
    return %c0_i32, %c0_i32_0 : i32, i32
  }
  func.func @transform_6(%arg0: i32, %arg1: i32) -> (i32, i32, i32, i32) {
    %c0_i32 = arith.constant 0 : i32
    %c0_i32_0 = arith.constant 0 : i32
    %c0_i32_1 = arith.constant 0 : i32
    return %c0_i32, %arg0, %arg1, %c0_i32_0 : i32, i32, i32, i32
  }
}

module attributes {stable_mosaic.version = 11 : i64} {
  func.func @kernel(%arg0: i32, %arg1: i32, %arg2: memref<2x3x64x32xf32, #tpu.memory_space<any>>, %arg3: memref<1x16x11xf32, #tpu.memory_space<vmem>>, %arg4: memref<3xf32, #tpu.memory_space<smem>>, %arg5: memref<3xf32, #tpu.memory_space<smem>>, %arg6: memref<64x16xf32, #tpu.memory_space<vmem>>, %arg7: memref<11x32xf32, #tpu.memory_space<vmem>>, %arg8: memref<1x1x64x32xf32, #tpu.memory_space<vmem>>) attributes {dimension_semantics = [#tpu.dimension_semantics<parallel>, #tpu.dimension_semantics<parallel>], iteration_bounds = array<i64: 3, 1>, scalar_prefetch = 0 : i64, scratch_operands = 0 : i64, tpu.core_type = #tpu.core_type<tc>, window_params = [{}, {transform_indices = @transform_1, window_bounds = array<i64: 1, 16, 11>}, {transform_indices = @transform_2, window_bounds = array<i64: 3>}, {transform_indices = @transform_3, window_bounds = array<i64: 3>}, {transform_indices = @transform_4, window_bounds = array<i64: 64, 16>}, {pipeline_mode = #tpu.pipeline_mode<synchronous>, transform_indices = @transform_5, window_bounds = array<i64: 11, 32>}, {transform_indices = @transform_6, window_bounds = array<i64: 1, 1, 64, 32>}]} {
    %c0 = arith.constant 0 : index
    %c0_0 = arith.constant 0 : index
    %c0_1 = arith.constant 0 : index
    %0 = vector.load %arg3[%c0, %c0_0, %c0_1] : memref<1x16x11xf32, #tpu.memory_space<vmem>>, vector<1x16x11xf32>
    %1 = vector.shape_cast %0 : vector<1x16x11xf32> to vector<16x11xf32>
    %2 = arith.index_cast %arg0 : i32 to index
    %3 = memref.load %arg4[%2] : memref<3xf32, #tpu.memory_space<smem>>
    %4 = vector.broadcast %3 : f32 to vector<16x11xf32>
    %5 = arith.subf %1, %4 : vector<16x11xf32>
    %6 = arith.index_cast %arg0 : i32 to index
    %7 = memref.load %arg5[%6] : memref<3xf32, #tpu.memory_space<smem>>
    %8 = vector.broadcast %7 : f32 to vector<16x11xf32>
    %9 = arith.mulf %5, %8 : vector<16x11xf32>
    %c0_2 = arith.constant 0 : index
    %c0_3 = arith.constant 0 : index
    %10 = vector.load %arg6[%c0_2, %c0_3] : memref<64x16xf32, #tpu.memory_space<vmem>>, vector<64x16xf32>
    %c0_4 = arith.constant 0 : index
    %c0_5 = arith.constant 0 : index
    %11 = vector.load %arg7[%c0_4, %c0_5] : memref<11x32xf32, #tpu.memory_space<vmem>>, vector<11x32xf32>
    %cst = arith.constant dense<0.000000e+00> : vector<64x11xf32>
    %12 = tpu.matmul %10, %9, %cst {dimension_numbers = #tpu.dot_dimension_numbers<[1], [0], [0], [1], [0, 0, 1, 1], [], []>} : vector<64x16xf32>, vector<16x11xf32>, vector<64x11xf32> -> vector<64x11xf32>
    %cst_6 = arith.constant dense<0.000000e+00> : vector<64x32xf32>
    %13 = tpu.matmul %12, %11, %cst_6 {dimension_numbers = #tpu.dot_dimension_numbers<[1], [0], [0], [1], [0, 0, 1, 1], [], []>} : vector<64x11xf32>, vector<11x32xf32>, vector<64x32xf32> -> vector<64x32xf32>
    %c0_7 = arith.constant 0 : index
    %c0_8 = arith.constant 0 : index
    %c0_9 = arith.constant 0 : index
    %c0_10 = arith.constant 0 : index
    %14 = vector.load %arg8[%c0_7, %c0_8, %c0_9, %c0_10] : memref<1x1x64x32xf32, #tpu.memory_space<vmem>>, vector<1x1x64x32xf32>
    %15 = vector.shape_cast %14 : vector<1x1x64x32xf32> to vector<64x32xf32>
    %16 = vector.shape_cast %13 : vector<64x32xf32> to vector<1x1x64x32xf32>
    tpu.vector_store %arg8[%c0_7, %c0_8, %c0_9, %c0_10], %16 {strides = array<i32>} : memref<1x1x64x32xf32, #tpu.memory_space<vmem>>, vector<1x1x64x32xf32>,
    return
  }
  func.func @transform_1(%arg0: i32, %arg1: i32) -> (i32, i32, i32) {
    %c0_i32 = arith.constant 0 : i32
    %c0_i32_0 = arith.constant 0 : i32
    %c0_i32_1 = arith.constant 0 : i32
    return %arg0, %c0_i32, %c0_i32_0 : i32, i32, i32
  }
  func.func @transform_2(%arg0: i32, %arg1: i32) -> i32 {
    %c0_i32 = arith.constant 0 : i32
    %c0_i32_0 = arith.constant 0 : i32
    return %c0_i32 : i32
  }
  func.func @transform_3(%arg0: i32, %arg1: i32) -> i32 {
    %c0_i32 = arith.constant 0 : i32
    %c0_i32_0 = arith.constant 0 : i32
    return %c0_i32 : i32
  }
  func.func @transform_4(%arg0: i32, %arg1: i32) -> (i32, i32) {
    %c0_i32 = arith.constant 0 : i32
    %c0_i32_0 = arith.constant 0 : i32
    return %arg1, %c0_i32 : i32, i32
  }
  func.func @transform_5(%arg0: i32, %arg1: i32) -> (i32, i32) {
    %c0_i32 = arith.constant 0 : i32
    %c0_i32_0 = arith.constant 0 : i32
    %c0_i32_1 = arith.constant 0 : i32
    return %c0_i32, %c0_i32_0 : i32, i32
  }
  func.func @transform_6(%arg0: i32, %arg1: i32) -> (i32, i32, i32, i32) {
    %c1_i32 = arith.constant 1 : i32
    %c0_i32 = arith.constant 0 : i32
    %c0_i32_0 = arith.constant 0 : i32
    return %c1_i32, %arg0, %arg1, %c0_i32 : i32, i32, i32, i32
  }
}

</mosaic_0001>

<bundles_post_ra>
// kernel: _batch_forward.2
= control target key start
LH: loop header
LB: loop body
LE: loop exit
PB: predicated region body
PF: predicated region fallthrough
CT: control target
= control target key end

     0   :  { %11 = vsyncpa [#allocation3], 0  ;;  %s1025_s0 = inlined_call_operand.vmem [shape: f32[2,3,64,32], index: 0, kind: input, shape index: {}, may-alias: {0,6}]   ;;  %s1026_s1 = inlined_call_operand.vmem [shape: f32[3,13,17], index: 1, kind: input, shape index: {}]   ;;  %s1027_s2 = inlined_call_operand.vmem [shape: f32[3], index: 2, kind: input, shape index: {}]   ;;  %s1028_s3 = inlined_call_operand.vmem [shape: f32[3], index: 3, kind: input, shape index: {}]   ;;  %s1029_s4 = inlined_call_operand.vmem [shape: f32[64,13], index: 4, kind: input, shape index: {}]   ;;  %s1030_s5 = inlined_call_operand.vmem [shape: f32[17,32], index: 5, kind: input, shape index: {}]   ;;  %s1031_s6 = inlined_call_operand.vmem [shape: f32[2,3,64,32], index: 6, kind: output, shape index: {}, may-alias: {0,6}]  }
   0x1   :  { %12 = vsyncpa [#allocation5], 0  ;;  %s894_s0 = smov 0   ;;  %s896_s21 = smov 0  }
   0x2   :  { %s898_s22 = smov 0  }
   0x3 LB: > { %s666_s23 = sadd.s32 4294967295, %s854_s22   ;;  %s30_s24 = sadd.s32 1, %s850_s21  ;;  %s854_s22 = sphi %s898_s22, %s18_s22   ;;  %s850_s21 = sphi %s896_s21, %s1041_s21   ;;  %s846_s0 = sphi %s894_s0, %s1040_s0  }
   0x4   : > { %p32_p0 = scmp.ge.s32.totalorder %s30_s24, 3  ;;  %p668_p1 = scmp.ge.s32.totalorder %s854_s22, 1 }
   0x5   : > { %p178_p2 = scmp.lt.s32.totalorder %s854_s22, 4  ;;  %p919_p4 = scmp.eq.s32.totalorder %s666_s23, 0 }
   0x6   : > { %s1043_s24 = smov (%p32_p0, %s30_s24), 0  ;;  %s191_s29 = sshll.u32 %s1027_s2, 4  ;;  %s192_s29 = int_to_ptr.vmem [resolvable:$true] %s191_s29 }
   0x7   : > { %p915_p3 = pnand %p668_p1, %p178_p2  ;;  %s202_s8 = sshll.u32 %s1028_s3, 4  ;;  %s203_s8 = int_to_ptr.vmem [resolvable:$true] %s202_s8 }
   0x8   : > { %s1036_s26 = scalar_select %p919_p4, 1, 0 }
   0x9   : > { %s1035_s25 = scalar_select %p915_p3, 1, 0 }
   0xa   : > { %p756_p5 = pneg %p915_p3  ;;  %s794_s10 = scalar_lea.vmem %s192_s29, 16 }
   0xb   : > { %p795_p7 = scmp.ne.s32.totalorder %s192_s29, %s794_s10  ;;  %p802_p11 = scmp.lt.s32.totalorder %s192_s29, %s192_s29 }
   0xc   : > { %p933_p6 = pnand %p919_p4, %p756_p5  ;;  %p803_p12 = scmp.lt.s32.totalorder %s794_s10, %s794_s10 }
   0xe   : > { %p796_p8 = pneg %p933_p6  ;;  %p804_p13 = por %p803_p12, %p802_p11 }
  0x10   : > { %p797_p9 = pnand %p796_p8, %p795_p7 }
  0x12   : > { %p798_p10 = pneg %p797_p9 }
  0x14   : > { %p805_p0 = pnand %p804_p13, %p798_p10 }
  0x16   : > { %808 = shalt.err (!%p805_p0)
}
  0x17   : > { %s856_s11 = smov [#allocation2]   ;;  %s809_s12 = scalar_lea.vmem %s203_s8, 16 }
  0x18   : > { %759 = dma.vmem_to_smem (!%p933_p6), %s192_s29, 16, %s856_s11, [#allocation3]  }
  0x19   : > { %p810_p1 = scmp.ne.s32.totalorder %s203_s8, %s809_s12  ;;  %p817_p4 = scmp.lt.s32.totalorder %s203_s8, %s203_s8 }
  0x1a   : > { %p818_p3 = scmp.lt.s32.totalorder %s809_s12, %s809_s12 }
  0x1b   : > { %p812_p2 = pnand %p810_p1, %p796_p8 }
  0x1c   : > { %p819_p7 = por %p818_p3, %p817_p4 }
  0x1d   : > { %p813_p5 = pneg %p812_p2 }
  0x1f   : > { %p820_p9 = pnand %p819_p7, %p813_p5 }
  0x21   : > { %823 = shalt.err (!%p820_p9)
}
  0x22   : > { %s857_s13 = smov [#allocation4]   ;;  %p1038_p10 = scmp.ne.s32.totalorder %s1035_s25, 0 }
  0x23   : > { %762 = dma.vmem_to_smem (!%p933_p6), %s203_s8, 16, %s857_s13, [#allocation5]  }
  0x24   : > { %235 = sbr.rel (%p1038_p10) target bundleno = 501 (0x1f5), region = 40  ;;  %p1039_p11 = scmp.ne.s32.totalorder (!%p1038_p10), %s1036_s26, 0 }
  0x2b   : > { %837 = dma.done.wait (%p1039_p11), [#allocation3], 16  }
  0x2c   : > { %839 = vsyncadd (%p1039_p11), [#allocation3], 4294967280 }
  0x2d   : > { %841 = dma.done.wait (%p1039_p11), [#allocation5], 16  }
  0x2e   : > { %843 = vsyncadd (%p1039_p11), [#allocation5], 4294967280 }
  0x2f   : > { %245 = sfence }
  0x30   : > { %v316_v0 = vld [vmem:[%s1030_s5] sm:$0xff]  ;;  %v317_v1 = vld [vmem:[%s1030_s5 + $0x8] sm:$0xff]  ;;  %p277_p3 = scmp.lt.s32.totalorder %s846_s0, 2  ;;  %s300_s18 = sld [smem:[#allocation2 + %s846_s0]]  ;;  %v318_v3 = vld [vmem:[%s1030_s5 + $0x10] sm:$0x1] }
  0x31   : > { %v736_v2 = vpack.c.bf16 %v317_v1, %v316_v0  ;;  %s304_s19 = sld [smem:[#allocation4 + %s846_s0]]  ;;  %vm326_vm0 = vcmask 1040384   ;;  %vm319_vm1 = vcmask 138240   ;;  %v310_v12 = vld [vmem:[%s1029_s4 + $0x10] sm:$0xff]  ;;  %vm405_vm2 = vcmask 105472   ;;  %v308_v13 = vld [vmem:[%s1029_s4] sm:$0xff] }
  0x32   : > { %s1045_s0 = smov (!%p277_p3, %s846_s0), 2  ;;  %727 = vmatprep.mubr.msk.f32.mxu1 %vm405_vm2, %v310_v12  ;;  %vm430_vm3 = vcmask 1044480   ;;  %vm858_vm4 = vmmov 1   ;;  %v311_v17 = vld [vmem:[%s1029_s4 + $0x18] sm:$0xff]  ;;  %v309_v18 = vld [vmem:[%s1029_s4 + $0x8] sm:$0xff]  ;;  %v312_v19 = vld [vmem:[%s1029_s4 + $0x20] sm:$0xff] }
  0x33   : > { %737 = vmatprep.subr.bf16.mxu0 %v736_v2  ;;  %s694_s25 = sshll.u32 %s1045_s0, 4  ;;  %vm741_vm5 = vmpackc.low %vm430_vm3, %vm858_vm4  ;;  %v313_v20 = vld [vmem:[%s1029_s4 + $0x28] sm:$0xff]  ;;  %v314_v21 = vld [vmem:[%s1029_s4 + $0x30] sm:$0xff]  ;;  %s695_s23 = sshll.u32 %s1045_s0, 6  ;;  %vm539_vm6 = vcmask 261120  }
  0x34   : > { %739 = vmatpush3.bf16.msra.mxu0 %v736_v2  ;;  %s281_s28 = scalar_lea.vmem %s1026_s1, %s694_s25  ;;  %v315_v22 = vld [vmem:[%s1029_s4 + $0x38] sm:$0xff]  ;;  %s296_s27 = scalar_lea.vmem %s1031_s6, %s695_s23 }
  0x35   : > { %715 = vmatprep.subr.msk.mxu0 %vm326_vm0, %v318_v3  ;;  %v298_v4 = vld [vmem:[%s281_s28] sm:$0xff]  ;;  %v299_v5 = vld [vmem:[%s281_s28 + $0x8] sm:$0x1f] }
  0x36   : > { %v301_v6 = vstv %s300_s18 }
  0x37   : > { %v305_v7 = vstv %s304_s19  ;;  %v302_v8 = vsub.f32 %v298_v4, %v301_v6  ;;  %v303_v9 = vsub.f32 %v299_v5, %v301_v6 }
  0x38   : > { %716 = vmatpush3.msk.msra.mxu0 %vm326_vm0, %v318_v3 }
  0x39   : > { %v306_v10 = vmul.f32 %v305_v7, %v302_v8  ;;  %v307_v11 = vmul.f32 %v305_v7, %v303_v9 }
  0x3b   : > { %717 = vmatprep.mubr.msk.f32.mxu0 %vm319_vm1, %v306_v10 }
  0x3c   : > { %718 = vmatmul.mubr.msk.f32.vlgmr.msra.gmra.mrb[0].mxu0 %vm319_vm1, %v307_v11 }
  0x3d   : > { %724 = vmatprep.mubr.msk.f32.mxu0 %vm405_vm2, %v308_v13 }
 0x10f   : > { %v719_v14 = vpop.f32.mrb[0].mxu0 }
 0x110   : > { %v396_v15 = vpop.f32.mrb[1].mxu0 }
 0x111   : > { %v740_v16 = vpack.c.bf16 %v719_v14, %v396_v15 }
 0x113   : > { %742 = vmatprep.subr.msk.bf16.mxu0 %vm741_vm5, %v740_v16  ;;  %746 = vmatprep.subr.msk.bf16.mxu1 %vm741_vm5, %v740_v16 }
 0x114   : > { %745 = vmatpush3.bf16.msk.msra.mxu0 %vm741_vm5, %v740_v16  ;;  %747 = vmatpush3.bf16.msk.msra.mxu1 %vm741_vm5, %v740_v16 }
 0x117   : > { %728 = vmatmul.mubr.msk.f32.vlgmr.msra.gmra.mrb[0].mxu1 %vm405_vm2, %v311_v17  ;;  %725 = vmatmul.mubr.msk.f32.vlgmr.msra.gmra.mrb[2].mxu0 %vm405_vm2, %v309_v18 }
 0x118   : > { %730 = vmatprep.mubr.msk.f32.mxu1 %vm405_vm2, %v312_v19 }
 0x11b   : > { %731 = vmatmul.mubr.msk.f32.gmra.mrb[2].mxu1 %vm405_vm2, %v313_v20 }
 0x11c   : > { %733 = vmatprep.mubr.msk.f32.mxu1 %vm405_vm2, %v314_v21 }
 0x11f   : > { %734 = vmatmul.mubr.msk.f32.gmra.mrb[4].mxu1 %vm405_vm2, %v315_v22 }
 0x1ea   : > { %v729_v23 = vpop.f32.mrb[0].mxu1  ;;  %v726_v24 = vpop.f32.mrb[2].mxu0 }
 0x1eb   : > { %543 = vst.msk [vmem:[%s296_s27 + $0x18] sm:$0xff] %vm539_vm6, %v729_v23  ;;  %v510_v25 = vpop.f32.mrb[1].mxu1  ;;  %541 = vst.msk [vmem:[%s296_s27 + $0x8] sm:$0xff] %vm539_vm6, %v726_v24  ;;  %v500_v26 = vpop.f32.mrb[3].mxu0 }
 0x1ec   : > { %542 = vst.msk [vmem:[%s296_s27 + $0x10] sm:$0xff] %vm539_vm6, %v510_v25  ;;  %540 = vst.msk [vmem:[%s296_s27] sm:$0xff] %vm539_vm6, %v500_v26 }
 0x1ee   : > { %v732_v27 = vpop.f32.mrb[2].mxu1 }
 0x1ef   : > { %545 = vst.msk [vmem:[%s296_s27 + $0x28] sm:$0xff] %vm539_vm6, %v732_v27  ;;  %v520_v28 = vpop.f32.mrb[3].mxu1 }
 0x1f0   : > { %544 = vst.msk [vmem:[%s296_s27 + $0x20] sm:$0xff] %vm539_vm6, %v520_v28 }
 0x1f2   : > { %v735_v29 = vpop.f32.mrb[4].mxu1 }
 0x1f3   : > { %547 = vst.msk [vmem:[%s296_s27 + $0x38] sm:$0xff] %vm539_vm6, %v735_v29  ;;  %v530_v30 = vpop.f32.mrb[5].mxu1 }
 0x1f4   : > { %546 = vst.msk [vmem:[%s296_s27 + $0x30] sm:$0xff] %vm539_vm6, %v530_v30 }
 0x1f5 PF: > { %s18_s22 = sadd.s32 1, %s854_s22   ;;  %s1040_s0 = smov %s850_s21 }
 0x1f6   : > { %p15_p4 = scmp.ge.s32.totalorder %s18_s22, 5   ;;  %s1041_s21 = smov %s1043_s24 }
 0x1f8   :  { %17 = sbr.rel (!%p15_p4) target bundleno = 3 (0x3), region = 82 }
 0x1ff   :  { %578 = vsyncpa [#allocation3], 1 }
 0x200   :  { %580 = vsyncpa [#allocation3 + $0x1], 1 }
 0x201   :  { %581 = vsyncpa [#allocation5], 1 }

// kernel: _batch_forward.3
= control target key start
LH: loop header
LB: loop body
LE: loop exit
PB: predicated region body
PF: predicated region fallthrough
CT: control target
= control target key end

     0   :  { %11 = vsyncpa [#allocation3], 0  ;;  %s1104_s0 = inlined_call_operand.vmem [shape: f32[2,3,64,32], index: 0, kind: input, shape index: {}, may-alias: {0,6}]   ;;  %s1105_s1 = inlined_call_operand.vmem [shape: f32[3,16,11], index: 1, kind: input, shape index: {}]   ;;  %s1106_s2 = inlined_call_operand.vmem [shape: f32[3], index: 2, kind: input, shape index: {}]   ;;  %s1107_s3 = inlined_call_operand.vmem [shape: f32[3], index: 3, kind: input, shape index: {}]   ;;  %s1108_s4 = inlined_call_operand.vmem [shape: f32[64,16], index: 4, kind: input, shape index: {}]   ;;  %s1109_s5 = inlined_call_operand.vmem [shape: f32[11,32], index: 5, kind: input, shape index: {}]   ;;  %s1110_s6 = inlined_call_operand.vmem [shape: f32[2,3,64,32], index: 6, kind: output, shape index: {}, may-alias: {0,6}]  }
   0x1   :  { %12 = vsyncpa [#allocation5], 0  ;;  %s968_s0 = smov 0   ;;  %s970_s21 = smov 0  }
   0x2   :  { %s972_s22 = smov 0  }
   0x3 LB: > { %s717_s23 = sadd.s32 4294967295, %s928_s22   ;;  %s30_s24 = sadd.s32 1, %s924_s21  ;;  %s928_s22 = sphi %s972_s22, %s18_s22   ;;  %s924_s21 = sphi %s970_s21, %s1120_s21   ;;  %s920_s0 = sphi %s968_s0, %s1119_s0  }
   0x4   : > { %p32_p0 = scmp.ge.s32.totalorder %s30_s24, 3  ;;  %p719_p1 = scmp.ge.s32.totalorder %s928_s22, 1 }
   0x5   : > { %p178_p2 = scmp.lt.s32.totalorder %s928_s22, 4  ;;  %p993_p4 = scmp.eq.s32.totalorder %s717_s23, 0 }
   0x6   : > { %s1122_s24 = smov (%p32_p0, %s30_s24), 0  ;;  %s191_s29 = sshll.u32 %s1106_s2, 4  ;;  %s192_s29 = int_to_ptr.vmem [resolvable:$true] %s191_s29 }
   0x7   : > { %p989_p3 = pnand %p719_p1, %p178_p2  ;;  %s202_s8 = sshll.u32 %s1107_s3, 4  ;;  %s203_s8 = int_to_ptr.vmem [resolvable:$true] %s202_s8 }
   0x8   : > { %s1115_s26 = scalar_select %p993_p4, 1, 0 }
   0x9   : > { %s1114_s25 = scalar_select %p989_p3, 1, 0 }
   0xa   : > { %p830_p5 = pneg %p989_p3  ;;  %s868_s10 = scalar_lea.vmem %s192_s29, 16 }
   0xb   : > { %p869_p7 = scmp.ne.s32.totalorder %s192_s29, %s868_s10  ;;  %p876_p11 = scmp.lt.s32.totalorder %s192_s29, %s192_s29 }
   0xc   : > { %p1007_p6 = pnand %p993_p4, %p830_p5  ;;  %p877_p12 = scmp.lt.s32.totalorder %s868_s10, %s868_s10 }
   0xe   : > { %p870_p8 = pneg %p1007_p6  ;;  %p878_p13 = por %p877_p12, %p876_p11 }
  0x10   : > { %p871_p9 = pnand %p870_p8, %p869_p7 }
  0x12   : > { %p872_p10 = pneg %p871_p9 }
  0x14   : > { %p879_p0 = pnand %p878_p13, %p872_p10 }
  0x16   : > { %882 = shalt.err (!%p879_p0)
}
  0x17   : > { %s930_s11 = smov [#allocation2]   ;;  %s883_s12 = scalar_lea.vmem %s203_s8, 16 }
  0x18   : > { %833 = dma.vmem_to_smem (!%p1007_p6), %s192_s29, 16, %s930_s11, [#allocation3]  }
  0x19   : > { %p884_p1 = scmp.ne.s32.totalorder %s203_s8, %s883_s12  ;;  %p891_p4 = scmp.lt.s32.totalorder %s203_s8, %s203_s8 }
  0x1a   : > { %p892_p3 = scmp.lt.s32.totalorder %s883_s12, %s883_s12 }
  0x1b   : > { %p886_p2 = pnand %p884_p1, %p870_p8 }
  0x1c   : > { %p893_p7 = por %p892_p3, %p891_p4 }
  0x1d   : > { %p887_p5 = pneg %p886_p2 }
  0x1f   : > { %p894_p9 = pnand %p893_p7, %p887_p5 }
  0x21   : > { %897 = shalt.err (!%p894_p9)
}
  0x22   : > { %s931_s13 = smov [#allocation4]   ;;  %p1117_p10 = scmp.ne.s32.totalorder %s1114_s25, 0 }
  0x23   : > { %836 = dma.vmem_to_smem (!%p1007_p6), %s203_s8, 16, %s931_s13, [#allocation5]  }
  0x24   : > { %235 = sbr.rel (%p1117_p10) target bundleno = 505 (0x1f9), region = 40  ;;  %p1118_p11 = scmp.ne.s32.totalorder (!%p1117_p10), %s1115_s26, 0 }
  0x2b   : > { %911 = dma.done.wait (%p1118_p11), [#allocation3], 16  }
  0x2c   : > { %913 = vsyncadd (%p1118_p11), [#allocation3], 4294967280 }
  0x2d   : > { %915 = dma.done.wait (%p1118_p11), [#allocation5], 16  }
  0x2e   : > { %917 = vsyncadd (%p1118_p11), [#allocation5], 4294967280 }
  0x2f   : > { %245 = sfence }
  0x30   : > { %p278_p3 = scmp.lt.s32.totalorder %s920_s0, 2  ;;  %s302_s14 = sld [smem:[#allocation2 + %s920_s0]]  ;;  %v310_v0 = vld [vmem:[%s1108_s4] sm:$0xff]  ;;  %vm320_vm0 = vcmask 130048   ;;  %vm475_vm1 = vcmask 1042432   ;;  %vm932_vm2 = vmmov 1  }
  0x31   : > { %s306_s17 = sld [smem:[#allocation4 + %s920_s0]]  ;;  %784 = vmatprep.mubr.msk.f32.mxu0 %vm320_vm0, %v310_v0  ;;  %v318_v1 = vld [vmem:[%s1109_s5] sm:$0xff]  ;;  %v319_v2 = vld [vmem:[%s1109_s5 + $0x8] sm:$0x7]  ;;  %vm817_vm3 = vmpackc.low %vm475_vm1, %vm932_vm2  ;;  %vm450_vm4 = vcmask 89088   ;;  %vm584_vm5 = vcmask 261120  }
  0x32   : > { %s1124_s0 = smov (!%p278_p3, %s920_s0), 2  ;;  %v816_v3 = vpack.c.bf16 %v319_v2, %v318_v1  ;;  %v311_v13 = vld [vmem:[%s1108_s4 + $0x8] sm:$0xff]  ;;  %v312_v14 = vld [vmem:[%s1108_s4 + $0x10] sm:$0xff]  ;;  %v313_v15 = vld [vmem:[%s1108_s4 + $0x18] sm:$0xff] }
  0x33   : > { %s758_s25 = sshll.u32 %s1124_s0, 4  ;;  %v314_v16 = vld [vmem:[%s1108_s4 + $0x20] sm:$0xff]  ;;  %v315_v17 = vld [vmem:[%s1108_s4 + $0x28] sm:$0xff]  ;;  %v316_v18 = vld [vmem:[%s1108_s4 + $0x30] sm:$0xff]  ;;  %s759_s19 = sshll.u32 %s1124_s0, 6 }
  0x34   : > { %s282_s28 = scalar_lea.vmem %s1105_s1, %s758_s25  ;;  %818 = vmatprep.subr.msk.bf16.mxu1 %vm817_vm3, %v816_v3  ;;  %v317_v19 = vld [vmem:[%s1108_s4 + $0x38] sm:$0xff]  ;;  %s649_s25 = scalar_lea.vmem %s1110_s6, %s759_s19 }
  0x35   : > { %v300_v4 = vld [vmem:[%s282_s28] sm:$0xff]  ;;  %v301_v5 = vld [vmem:[%s282_s28 + $0x8] sm:$0xff]  ;;  %821 = vmatpush3.bf16.msk.msra.mxu1 %vm817_vm3, %v816_v3 }
  0x36   : > { %v303_v6 = vstv %s302_s14 }
  0x37   : > { %v304_v7 = vsub.f32 %v300_v4, %v303_v6  ;;  %v305_v8 = vsub.f32 %v301_v5, %v303_v6  ;;  %v307_v9 = vstv %s306_s17 }
  0x39   : > { %v308_v10 = vmul.f32 %v307_v9, %v304_v7  ;;  %v309_v11 = vmul.f32 %v307_v9, %v305_v8 }
  0x3b   : > { %v812_v12 = vpack.c.bf16 %v309_v11, %v308_v10 }
  0x3d   : > { %813 = vmatprep.subr.bf16.mxu0 %v812_v12 }
  0x3e   : > { %815 = vmatpush3.bf16.msra.mxu0 %v812_v12 }
  0x41   : > { %785 = vmatmul.mubr.msk.f32.vlgmr.msra.gmra.mrb[0].mxu0 %vm320_vm0, %v311_v13 }
  0x42   : > { %787 = vmatprep.mubr.msk.f32.mxu0 %vm320_vm0, %v312_v14 }
  0x45   : > { %788 = vmatmul.mubr.msk.f32.gmra.mrb[2].mxu0 %vm320_vm0, %v313_v15 }
  0x46   : > { %790 = vmatprep.mubr.msk.f32.mxu0 %vm320_vm0, %v314_v16 }
  0x49   : > { %791 = vmatmul.mubr.msk.f32.gmra.mrb[4].mxu0 %vm320_vm0, %v315_v17 }
  0x4a   : > { %793 = vmatprep.mubr.msk.f32.mxu0 %vm320_vm0, %v316_v18 }
  0x4d   : > { %794 = vmatmul.mubr.msk.f32.gmra.mrb[6].mxu0 %vm320_vm0, %v317_v19 }
 0x114   : > { %v786_v20 = vpop.f32.mrb[0].mxu0 }
 0x115   : > { %v411_v21 = vpop.f32.mrb[1].mxu0 }
 0x116   : > { %800 = vmatprep.mubr.msk.f32.mxu1 %vm450_vm4, %v411_v21 }
 0x117   : > { %801 = vmatmul.mubr.msk.f32.vlgmr.msra.gmra.mrb[0].mxu1 %vm450_vm4, %v786_v20 }
 0x118   : > { %v789_v22 = vpop.f32.mrb[2].mxu0 }
 0x119   : > { %v421_v23 = vpop.f32.mrb[3].mxu0 }
 0x11a   : > { %803 = vmatprep.mubr.msk.f32.mxu1 %vm450_vm4, %v421_v23 }
 0x11b   : > { %804 = vmatmul.mubr.msk.f32.gmra.mrb[2].mxu1 %vm450_vm4, %v789_v22 }
 0x11c   : > { %v792_v24 = vpop.f32.mrb[4].mxu0 }
 0x11d   : > { %v431_v25 = vpop.f32.mrb[5].mxu0 }
 0x11e   : > { %806 = vmatprep.mubr.msk.f32.mxu1 %vm450_vm4, %v431_v25 }
 0x11f   : > { %807 = vmatmul.mubr.msk.f32.gmra.mrb[4].mxu1 %vm450_vm4, %v792_v24 }
 0x120   : > { %v795_v26 = vpop.f32.mrb[6].mxu0 }
 0x121   : > { %v441_v27 = vpop.f32.mrb[7].mxu0 }
 0x122   : > { %809 = vmatprep.mubr.msk.f32.mxu1 %vm450_vm4, %v441_v27 }
 0x123   : > { %810 = vmatmul.mubr.msk.f32.gmra.mrb[6].mxu1 %vm450_vm4, %v795_v26 }
 0x1ea   : > { %v802_v28 = vpop.f32.mrb[0].mxu1 }
 0x1eb   : > { %749 = vst.msk [vmem:[%s649_s25 + $0xc8] sm:$0xff] %vm584_vm5, %v802_v28  ;;  %v545_v29 = vpop.f32.mrb[1].mxu1 }
 0x1ec   : > { %748 = vst.msk [vmem:[%s649_s25 + $0xc0] sm:$0xff] %vm584_vm5, %v545_v29 }
 0x1ee   : > { %v805_v30 = vpop.f32.mrb[2].mxu1 }
 0x1ef   : > { %751 = vst.msk [vmem:[%s649_s25 + $0xd8] sm:$0xff] %vm584_vm5, %v805_v30  ;;  %v555_v31 = vpop.f32.mrb[3].mxu1 }
 0x1f0   : > { %750 = vst.msk [vmem:[%s649_s25 + $0xd0] sm:$0xff] %vm584_vm5, %v555_v31 }
 0x1f2   : > { %v808_v32 = vpop.f32.mrb[4].mxu1 }
 0x1f3   : > { %753 = vst.msk [vmem:[%s649_s25 + $0xe8] sm:$0xff] %vm584_vm5, %v808_v32  ;;  %v565_v33 = vpop.f32.mrb[5].mxu1 }
 0x1f4   : > { %752 = vst.msk [vmem:[%s649_s25 + $0xe0] sm:$0xff] %vm584_vm5, %v565_v33 }
 0x1f6   : > { %v811_v34 = vpop.f32.mrb[6].mxu1 }
 0x1f7   : > { %755 = vst.msk [vmem:[%s649_s25 + $0xf8] sm:$0xff] %vm584_vm5, %v811_v34  ;;  %v575_v35 = vpop.f32.mrb[7].mxu1 }
 0x1f8   : > { %754 = vst.msk [vmem:[%s649_s25 + $0xf0] sm:$0xff] %vm584_vm5, %v575_v35 }
 0x1f9 PF: > { %s18_s22 = sadd.s32 1, %s928_s22   ;;  %s1119_s0 = smov %s924_s21 }
 0x1fa   : > { %p15_p4 = scmp.ge.s32.totalorder %s18_s22, 5   ;;  %s1120_s21 = smov %s1122_s24 }
 0x1fc   :  { %17 = sbr.rel (!%p15_p4) target bundleno = 3 (0x3), region = 82 }
 0x203   :  { %625 = vsyncpa [#allocation3], 1 }
 0x204   :  { %627 = vsyncpa [#allocation3 + $0x1], 1 }
 0x205   :  { %628 = vsyncpa [#allocation5], 1 }

</bundles_post_ra>
